<compile_context>
chip_gen: v7x
topology: tpu7x:2x2x1
jax: 0.10.0
libtpu: 0.0.40
codegen_flags: <defaults>
</compile_context>

<pallas_src>
import functools

import jax
import jax.numpy as jnp
from jax.experimental import pallas as pl
from jax.experimental.pallas import tpu as pltpu

_SMALL_PROBLEM_ELEMS = 32 * 1024  # below this, pure-JAX/XLA fusion beats kernel launch


def _kl_loss_kernel(pred_ref, label_ref, out_ref, *, total_rows, tile_rows, ragged):
    pred = pred_ref[...].astype(jnp.float32)      # (TB, C)
    label = label_ref[...].astype(jnp.float32)    # (TB, C)

    # log_softmax(prediction, axis=1) pieces
    p_max = jnp.max(pred, axis=1, keepdims=True)
    p_shift = pred - p_max
    p_lse = jnp.log(jnp.sum(jnp.exp(p_shift), axis=1, keepdims=True))   # (TB, 1)

    # softmax(label * 10, axis=1) pieces (kept un-normalized)
    l10 = label * 10.0
    l_max = jnp.max(l10, axis=1, keepdims=True)
    l_shift = l10 - l_max
    l_exp = jnp.exp(l_shift)
    l_sum = jnp.sum(l_exp, axis=1, keepdims=True)                       # (TB, 1)

    # Fused KL integrand (q > 0 always since it comes from a softmax):
    #   sum_k q*(log q - log p) = s/l_sum - log(l_sum) + p_lse
    s = jnp.sum(l_exp * (l_shift - p_shift), axis=1, keepdims=True)     # (TB, 1)
    kl_rows = s / l_sum - jnp.log(l_sum) + p_lse                        # (TB, 1)

    if ragged:
        # Last tile may extend past the batch: zero the contribution of padded rows.
        # (select drops any NaN/inf computed from padded data.)
        row = jax.lax.broadcasted_iota(jnp.int32, kl_rows.shape, 0)
        global_row = pl.program_id(0) * tile_rows + row
        kl_rows = jnp.where(global_row < total_rows, kl_rows, 0.0)

    partial = jnp.sum(kl_rows, axis=0, keepdims=True)                   # (1, 1)
    # Lane-dense, unmasked full-vreg store of the per-tile partial sum.
    out_ref[...] = jnp.broadcast_to(partial, (1, 8, 128)).astype(jnp.float32)


def _vmem_limit_bytes():
    """Scoped-VMEM limit to request, derived from the actual chip's VMEM capacity."""
    try:
        info = pltpu.get_tpu_info()
        cap = int(getattr(info, "vmem_capacity_bytes"))
    except Exception:
        # Unknown part: assume the smallest (v7x, 64 MiB physical) and stay safe.
        cap = 64 * 1024 * 1024
    # Leave headroom for Mosaic internal scratch / output buffers; cap at 100 MiB.
    return min(int(cap * 0.75), 100 * 1024 * 1024)


def _pick_tile_rows(B, C, itemsize, vmem_limit):
    """Largest batch tile whose full VMEM footprint (double-buffered inputs at their HBM
    dtype + ~5 f32 full-tile intermediates) fits comfortably under vmem_limit, split so
    that there are >=2 grid steps whenever possible (v7x megacore)."""
    # Per-row VMEM bytes: 2 inputs x 2 pipeline buffers at input dtype + ~5 f32 temps.
    bytes_per_row = C * (2 * 2 * itemsize + 5 * 4)
    budget_rows = max(8, int(vmem_limit * 0.75) // max(1, bytes_per_row))

    tb = min(B, budget_rows)
    tb = max(8, (tb // 8) * 8)          # sublane multiple; ragged last tile is masked

    # Guarantee >=2 grid steps when the batch allows it, so the "parallel" grid axis
    # can be sharded across both v7x TensorCores (harmless on single-TC v5e/v6e).
    if B >= 16:
        half = ((pl.cdiv(B, 2) + 7) // 8) * 8
        tb = min(tb, half)

    if tb >= B:
        tb = B                          # single full-batch block (always a legal block)
    return tb


def _kl_loss_jax(prediction, label):
    """Pure-JAX fallback for tiny problems (kernel-launch overhead dominated)."""
    log_p = jax.nn.log_softmax(prediction.astype(jnp.float32), axis=1)
    l10 = label.astype(jnp.float32) * 10.0
    q = jax.nn.softmax(l10, axis=1)
    log_q = jax.nn.log_softmax(l10, axis=1)
    return jnp.sum(q * (log_q - log_p)) / prediction.shape[0]


def kl_loss(prediction, label, tile_rows=None, force_pallas=False):
    if prediction.ndim != 2 or prediction.shape != label.shape:
        raise ValueError("kl_loss expects two (batch, classes) arrays of equal shape")
    B, C = prediction.shape

    if not force_pallas and B * C < _SMALL_PROBLEM_ELEMS:
        return _kl_loss_jax(prediction, label)

    vmem_limit = _vmem_limit_bytes()
    itemsize = max(jnp.dtype(prediction.dtype).itemsize, jnp.dtype(label.dtype).itemsize)

    if tile_rows is None:
        tb = _pick_tile_rows(B, C, itemsize, vmem_limit)
    else:
        tb = int(tile_rows)
        if tb <= 0:
            raise ValueError("tile_rows must be positive")
        tb = min(tb, B)
        if tb != B and tb % 8 != 0:
            raise ValueError("tile_rows must be a multiple of 8 (or >= batch size)")

    num_tiles = pl.cdiv(B, tb)
    ragged = (B % tb) != 0

    cost = pl.CostEstimate(
        flops=10 * B * C,
        transcendentals=2 * B * C + 2 * B,
        bytes_accessed=B * C * (jnp.dtype(prediction.dtype).itemsize
                                + jnp.dtype(label.dtype).itemsize)
        + num_tiles * 8 * 128 * 4,
    )

    kernel = functools.partial(
        _kl_loss_kernel, total_rows=B, tile_rows=tb, ragged=ragged)

    partials = pl.pallas_call(
        kernel,
        out_shape=jax.ShapeDtypeStruct((num_tiles, 8, 128), jnp.float32),
        grid_spec=pltpu.PrefetchScalarGridSpec(
            num_scalar_prefetch=0,
            grid=(num_tiles,),
            in_specs=[
                pl.BlockSpec((tb, C), lambda i: (i, 0)),
                pl.BlockSpec((tb, C), lambda i: (i, 0)),
            ],
            out_specs=pl.BlockSpec((1, 8, 128), lambda i: (i, 0, 0)),
        ),
        compiler_params=pltpu.CompilerParams(
            dimension_semantics=("parallel",),
            vmem_limit_bytes=vmem_limit,
        ),
        cost_estimate=cost,
    )(prediction, label)

    # Tiny wrapper-side reduction over num_tiles scalars + batchmean normalization.
    return jnp.sum(partials[:, 0, 0]) * (1.0 / B)


def kl_loss_ref(prediction, label):
    # Pure-JAX reference matching the PyTorch module semantics.
    return _kl_loss_jax(prediction, label)


if __name__ == "__main__":
    key = jax.random.PRNGKey(0)
    k1, k2, k3, k4, k5, k6, k7, k8 = jax.random.split(key, 8)

    # 1) Small shape consistent with the module (batch, num_classes); force Pallas path.
    B, C = 8, 32
    prediction = jax.random.normal(k1, (B, C), dtype=jnp.float32)
    label = jax.random.normal(k2, (B, C), dtype=jnp.float32)
    loss = kl_loss(prediction, label, force_pallas=True)
    jax.block_until_ready(loss)
    ref = kl_loss_ref(prediction, label)
    assert jnp.allclose(loss, ref, atol=1e-5, rtol=1e-5), (loss, ref)

    # 2) Ragged batch (20 % 8 != 0) and non-128-multiple class count (lane padding).
    B2, C2 = 20, 100
    pred2 = jax.random.normal(k3, (B2, C2), dtype=jnp.float32)
    lab2 = jax.random.normal(k4, (B2, C2), dtype=jnp.float32)
    loss2 = kl_loss(pred2, lab2, tile_rows=8, force_pallas=True)   # 3 tiles, last masked
    jax.block_until_ready(loss2)
    ref2 = kl_loss_ref(pred2, lab2)
    assert jnp.allclose(loss2, ref2, atol=1e-5, rtol=1e-5), (loss2, ref2)

    # 3) Auto-tiled multi-tile path (>=2 tiles even though one block would fit VMEM).
    B3, C3 = 64, 256
    pred3 = jax.random.normal(k5, (B3, C3), dtype=jnp.float32)
    lab3 = jax.random.normal(k6, (B3, C3), dtype=jnp.float32)
    loss3 = kl_loss(pred3, lab3, force_pallas=True)
    jax.block_until_ready(loss3)
    ref3 = kl_loss_ref(pred3, lab3)
    assert jnp.allclose(loss3, ref3, atol=1e-5, rtol=1e-5), (loss3, ref3)

    # 4) bf16 inputs (itemsize-aware tiling; in-kernel f32 upcast keeps math exact).
    pred4 = jax.random.normal(k7, (B3, C3), dtype=jnp.bfloat16)
    lab4 = jax.random.normal(k8, (B3, C3), dtype=jnp.bfloat16)
    loss4 = kl_loss(pred4, lab4, force_pallas=True)
    jax.block_until_ready(loss4)
    ref4 = kl_loss_ref(pred4, lab4)
    assert jnp.allclose(loss4, ref4, atol=1e-3, rtol=1e-3), (loss4, ref4)

    print("KERNEL_OK")
</pallas_src>

<mosaic_0001>
module attributes {stable_mosaic.version = 11 : i64} {
  func.func @_kl_loss_kernel(%arg0: i32, %arg1: memref<8x32xf32, #tpu.memory_space<vmem>>, %arg2: memref<8x32xf32, #tpu.memory_space<vmem>>, %arg3: memref<1x8x128xf32, #tpu.memory_space<vmem>>) attributes {dimension_semantics = [#tpu.dimension_semantics<parallel>], iteration_bounds = array<i64: 1>, scalar_prefetch = 0 : i64, scratch_operands = 0 : i64, tpu.core_type = #tpu.core_type<tc>, window_params = [{transform_indices = @transform_0, window_bounds = array<i64: 8, 32>}, {transform_indices = @transform_1, window_bounds = array<i64: 8, 32>}, {transform_indices = @transform_2, window_bounds = array<i64: 1, 8, 128>}]} {
    %c0 = arith.constant 0 : index
    %c0_0 = arith.constant 0 : index
    %0 = vector.load %arg1[%c0, %c0_0] : memref<8x32xf32, #tpu.memory_space<vmem>>, vector<8x32xf32>
    %c0_1 = arith.constant 0 : index
    %c0_2 = arith.constant 0 : index
    %1 = vector.load %arg2[%c0_1, %c0_2] : memref<8x32xf32, #tpu.memory_space<vmem>>, vector<8x32xf32>
    %cst = arith.constant dense<0xFF800000> : vector<8xf32>
    %2 = vector.multi_reduction <maximumf>, %0, %cst [1] : vector<8x32xf32> to vector<8xf32>
    %3 = vector.shape_cast %2 : vector<8xf32> to vector<8x1xf32>
    %4 = vector.broadcast %3 : vector<8x1xf32> to vector<8x32xf32>
    %5 = arith.subf %0, %4 : vector<8x32xf32>
    %6 = math.exp %5 : vector<8x32xf32>
    %cst_3 = arith.constant dense<0.000000e+00> : vector<8xf32>
    %7 = vector.multi_reduction <add>, %6, %cst_3 [1] : vector<8x32xf32> to vector<8xf32>
    %8 = vector.shape_cast %7 : vector<8xf32> to vector<8x1xf32>
    %9 = math.log %8 : vector<8x1xf32>
    %cst_4 = arith.constant 1.000000e+01 : f32
    %10 = vector.broadcast %cst_4 : f32 to vector<8x32xf32>
    %11 = arith.mulf %1, %10 : vector<8x32xf32>
    %cst_5 = arith.constant dense<0xFF800000> : vector<8xf32>
    %12 = vector.multi_reduction <maximumf>, %11, %cst_5 [1] : vector<8x32xf32> to vector<8xf32>
    %13 = vector.shape_cast %12 : vector<8xf32> to vector<8x1xf32>
    %14 = vector.broadcast %13 : vector<8x1xf32> to vector<8x32xf32>
    %15 = arith.subf %11, %14 : vector<8x32xf32>
    %16 = math.exp %15 : vector<8x32xf32>
    %cst_6 = arith.constant dense<0.000000e+00> : vector<8xf32>
    %17 = vector.multi_reduction <add>, %16, %cst_6 [1] : vector<8x32xf32> to vector<8xf32>
    %18 = vector.shape_cast %17 : vector<8xf32> to vector<8x1xf32>
    %19 = arith.subf %15, %5 : vector<8x32xf32>
    %20 = arith.mulf %16, %19 : vector<8x32xf32>
    %cst_7 = arith.constant dense<0.000000e+00> : vector<8xf32>
    %21 = vector.multi_reduction <add>, %20, %cst_7 [1] : vector<8x32xf32> to vector<8xf32>
    %22 = vector.shape_cast %21 : vector<8xf32> to vector<8x1xf32>
    %23 = arith.divf %22, %18 : vector<8x1xf32>
    %24 = math.log %18 : vector<8x1xf32>
    %25 = arith.subf %23, %24 : vector<8x1xf32>
    %26 = arith.addf %25, %9 : vector<8x1xf32>
    %cst_8 = arith.constant dense<0.000000e+00> : vector<1xf32>
    %27 = vector.multi_reduction <add>, %26, %cst_8 [0] : vector<8x1xf32> to vector<1xf32>
    %28 = vector.shape_cast %27 : vector<1xf32> to vector<1x1xf32>
    %29 = vector.shape_cast %28 : vector<1x1xf32> to vector<1x1x1xf32>
    %30 = vector.broadcast %29 : vector<1x1x1xf32> to vector<1x8x128xf32>
    %c0_9 = arith.constant 0 : index
    %c0_10 = arith.constant 0 : index
    %c0_11 = arith.constant 0 : index
    %31 = vector.load %arg3[%c0_9, %c0_10, %c0_11] : memref<1x8x128xf32, #tpu.memory_space<vmem>>, vector<1x8x128xf32>
    tpu.vector_store %arg3[%c0_9, %c0_10, %c0_11], %30 {strides = array<i32>} : memref<1x8x128xf32, #tpu.memory_space<vmem>>, vector<1x8x128xf32>,
    return
  }
  func.func @transform_0(%arg0: i32) -> (i32, i32) {
    %c0_i32 = arith.constant 0 : i32
    %c0_i32_0 = arith.constant 0 : i32
    return %arg0, %c0_i32 : i32, i32
  }
  func.func @transform_1(%arg0: i32) -> (i32, i32) {
    %c0_i32 = arith.constant 0 : i32
    %c0_i32_0 = arith.constant 0 : i32
    return %arg0, %c0_i32 : i32, i32
  }
  func.func @transform_2(%arg0: i32) -> (i32, i32, i32) {
    %c0_i32 = arith.constant 0 : i32
    %c0_i32_0 = arith.constant 0 : i32
    %c0_i32_1 = arith.constant 0 : i32
    return %arg0, %c0_i32, %c0_i32_0 : i32, i32, i32
  }
}

</mosaic_0001>

<bundles_post_ra>
// kernel: tpu_custom_call.1
= control target key start
LH: loop header
LB: loop body
LE: loop exit
PB: predicated region body
PF: predicated region fallthrough
CT: control target
= control target key end

     0   :  { %7 = vsyncpa [#allocation3], 0  ;;  %s238_s0 = inlined_call_operand.hbm [shape: f32[8,32], index: 0, kind: input, shape index: {}]   ;;  %s239_s1 = inlined_call_operand.hbm [shape: f32[8,32], index: 1, kind: input, shape index: {}]   ;;  %s240_s2 = inlined_call_operand.hbm [shape: f32[1,8,128], index: 2, kind: output, shape index: {}]  }
   0x1   :  { %8 = vsyncpa [#allocation6], 0 }
   0x2   :  { %9 = vsyncpa [#allocation4], 0  ;;  %s179_s9 = smov [#allocation2]   ;;  %s180_s11 = smov [#allocation5]  }
   0x3   :  { %s16_s10 = sshll.u32 %s179_s9, 4  ;;  %s26_s12 = sshll.u32 %s180_s11, 4  ;;  %s17_s10 = int_to_ptr.vmem [resolvable:$true] %s16_s10  ;;  %s27_s12 = int_to_ptr.vmem [resolvable:$true] %s26_s12 }
   0x4   :  { %s107_s15 = scalar_lea.hbm %s238_s0, 128 }
   0x5   :  { %p108_p0 = scmp.ne.s32.totalorder %s238_s0, %s107_s15  ;;  %p111_p1 = scmp.lt.u32.totalorder %s107_s15, %s238_s0 }
   0x7   :  { %p113_p2 = pnand %p111_p1, %p108_p0 }
   0x9   :  { %116 = shalt.err (!%p113_p2)
}
   0xa   :  { %s117_s20 = scalar_lea.vmem %s17_s10, 128  ;;  %p122_p4 = scmp.lt.s32.totalorder %s17_s10, %s17_s10 }
   0xb   :  { %p118_p3 = scmp.ne.s32.totalorder %s17_s10, %s117_s20  ;;  %p123_p5 = scmp.lt.s32.totalorder %s117_s20, %s117_s20 }
   0xd   :  { %p124_p6 = por %p123_p5, %p122_p4 }
   0xf   :  { %p125_p7 = pnand %p124_p6, %p118_p3 }
  0x11   :  { %128 = shalt.err (!%p125_p7)
}
  0x12   :  { %19 = dma.hbm_to_vmem [thread:$0]  %s238_s0, 128, %s17_s10, [#allocation3]  }
  0x13   :  { %s129_s25 = scalar_lea.hbm %s239_s1, 128 }
  0x14   :  { %p130_p8 = scmp.ne.s32.totalorder %s239_s1, %s129_s25  ;;  %p133_p9 = scmp.lt.u32.totalorder %s129_s25, %s239_s1 }
  0x16   :  { %p135_p10 = pnand %p133_p9, %p130_p8 }
  0x18   :  { %138 = shalt.err (!%p135_p10)
}
  0x19   :  { %s139_s30 = scalar_lea.vmem %s27_s12, 128  ;;  %p144_p12 = scmp.lt.s32.totalorder %s27_s12, %s27_s12 }
  0x1a   :  { %p140_p11 = scmp.ne.s32.totalorder %s27_s12, %s139_s30  ;;  %p145_p13 = scmp.lt.s32.totalorder %s139_s30, %s139_s30 }
  0x1c   :  { %p146_p0 = por %p145_p13, %p144_p12 }
  0x1e   :  { %p147_p1 = pnand %p146_p0, %p140_p11 }
  0x20   :  { %150 = shalt.err (!%p147_p1)
}
  0x21   :  { %29 = dma.hbm_to_vmem [thread:$0]  %s239_s1, 128, %s27_s12, [#allocation6]  }
  0x22   :  { %173 = dma.done.wait [#allocation3], 128  }
  0x23   :  { %174 = vsyncadd [#allocation3], 4294967168 }
  0x24   :  { %175 = dma.done.wait [#allocation6], 128  }
  0x25   :  { %176 = vsyncadd [#allocation6], 4294967168  ;;  %v37_v0 = vld [vmem:[#allocation5] sm:$0xff]  ;;  %vm38_vm0 = vcmask 261120   ;;  %v36_v2 = vld [vmem:[#allocation2] sm:$0xff]  ;;  %s181_s1 = smov [#allocation7]  }
  0x26   :  { %v50_v1 = vmul.f32 10.0, %v37_v0  ;;  %v39_v4 = vsel %vm38_vm0, %v36_v2, -inf  ;;  %s84_s4 = sshll.u32 %s181_s1, 4  ;;  %s85_s4 = int_to_ptr.vmem [resolvable:$true] %s84_s4 }
  0x27   :  { %s151_s5 = scalar_lea.vmem %s85_s4, 128  ;;  %p156_p3 = scmp.lt.s32.totalorder %s85_s4, %s85_s4 }
  0x28   :  { %v51_v3 = vsel %vm38_vm0, %v50_v1, -inf  ;;  %p152_p2 = scmp.ne.s32.totalorder %s85_s4, %s151_s5  ;;  %p157_p4 = scmp.lt.s32.totalorder %s151_s5, %s151_s5 }
  0x29   :  { %52 = vmax.xlane.f32.xlu0 %v51_v3 }
  0x2a   :  { %p158_p5 = por %p157_p4, %p156_p3 }
  0x2c   :  { %p159_p6 = pnand %p158_p5, %p152_p2 }
  0x2d   :  { %40 = vmax.xlane.f32.xlu0 %v39_v4 }
  0xb6   :  { %v53_v5 = vpop.xlane.xlu0 %52 }
  0xb7   :  { %v54_v6 = vsub.f32 %v50_v1, %v53_v5 }
  0xb9   :  { %v55_v7 = vmul.f32 1.442695, %v54_v6 }
  0xba   :  { %v41_v8 = vpop.xlane.xlu0 %40 }
  0xbb   :  { %97 = vpow2.f32 %v55_v7  ;;  %v42_v9 = vsub.f32 %v36_v2, %v41_v8 }
  0xbd   :  { %v43_v10 = vmul.f32 1.442695, %v42_v9  ;;  %v60_v11 = vsub.f32 %v54_v6, %v42_v9 }
  0xbf   :  { %99 = vpow2.f32 %v43_v10 }
  0xc5   :  { %v98_v12 = vpop.eup %97 }
  0xc6   :  { %v57_v13 = vsel %vm38_vm0, %v98_v12, 0.0  ;;  %v61_v14 = vmul.f32 %v98_v12, %v60_v11 }
  0xc7   :  { %58 = vadd.xlane.f32.xlu1 %v57_v13 }
  0xc8   :  { %v62_v15 = vsel %vm38_vm0, %v61_v14, 0.0 }
  0xc9   :  { %v100_v16 = vpop.eup %99  ;;  %63 = vadd.xlane.f32.xlu0 %v62_v15 }
  0xca   :  { %v45_v17 = vsel %vm38_vm0, %v100_v16, 0.0 }
  0xcb   :  { %46 = vadd.xlane.f32.xlu1 %v45_v17 }
 0x154   :  { %v59_v18 = vpop.xlane.xlu1 %58 }
 0x155   :  { %101 = vrcp.f32 %v59_v18 }
 0x156   :  { %103 = vlog2.f32 %v59_v18  ;;  %v64_v21 = vpop.xlane.xlu0 %63 }
 0x158   :  { %v47_v19 = vpop.xlane.xlu1 %46 }
 0x159   :  { %105 = vlog2.f32 %v47_v19 }
 0x15f   :  { %v102_v20 = vpop.eup %101 }
 0x160   :  { %v104_v22 = vpop.eup %103  ;;  %v66_v23 = vmul.f32 %v102_v20, %v64_v21 }
 0x161   :  { %v68_v24 = vmul.f32 0.6931472, %v104_v22 }
 0x163   :  { %v106_v25 = vpop.eup %105  ;;  %v69_v26 = vsub.f32 %v66_v23, %v68_v24 }
 0x164   :  { %v49_v27 = vmul.f32 0.6931472, %v106_v25 }
 0x166   :  { %v70_v28 = vadd.f32 %v69_v26, %v49_v27 }
 0x168   :  { %v71_v29 = vrot.slane %v70_v28, 4 }
 0x16a   :  { %v72_v30 = vadd.f32 %v71_v29, %v70_v28 }
 0x16c   :  { %v73_v31 = vrot.slane %v72_v30, 2 }
 0x16e   :  { %v74_v32 = vadd.f32 %v73_v31, %v72_v30 }
 0x170   :  { %v75_v33 = vrot.slane %v74_v32, 1 }
 0x172   :  { %v76_v34 = vadd.f32 %v75_v33, %v74_v32 }
 0x174   :  { %77 = vst [vmem:[#allocation7] sm:$0xff] %v76_v34 }
 0x175   :  { %162 = shalt.err (!%p159_p6)
}
 0x176   :  { %s163_s8 = scalar_lea.hbm %s240_s2, 128 }
 0x177   :  { %p164_p7 = scmp.ne.s32.totalorder %s240_s2, %s163_s8  ;;  %p167_p8 = scmp.lt.u32.totalorder %s163_s8, %s240_s2 }
 0x179   :  { %p169_p9 = pnand %p167_p8, %p164_p7 }
 0x17b   :  { %172 = shalt.err (!%p169_p9)
}
 0x17c   :  { %87 = dma.vmem_to_hbm [thread:$0]  %s85_s4, 128, %s240_s2, [#allocation4]  }
 0x17d   :  { %177 = dma.done.wait [#allocation4], 128  }
 0x17e   :  { %178 = vsyncadd [#allocation4], 4294967168 }
 0x17f   :  { %91 = vsyncpa [#allocation3], 1 }
 0x180   :  { %92 = vsyncpa [#allocation6], 1 }
 0x181   :  { %93 = vsyncpa [#allocation4], 1 }

</bundles_post_ra>
